<compile_context>
chip_gen: v6e
topology: v6e:2x2x1
jax: 0.10.0
libtpu: 0.0.40
codegen_flags: <defaults>
</compile_context>

<pallas_src>
import math

import numpy as np
import jax
import jax.numpy as jnp
from jax import lax
from jax.experimental import pallas as pl
from jax.experimental.pallas import tpu as pltpu


def _round_up(x, m):
    return ((x + m - 1) // m) * m


def _bidir_rows_kernel(x_ref, mask_ref, wf_ref, wb_ref, bf_ref, bb_ref, out_ref):
    """One tile of flattened (batch*time) rows.

    x_ref    : (TM, D) f32        input rows (LayerNorm input + residual source)
    mask_ref : (TM, 1) f32        1.0 where t < lengths[b] for that row, else 0.0
    wf_ref   : (D, D)  bf16/f32   gamma-folded, pre-transposed (Wl_f @ Wf)^T
    wb_ref   : (D, D)  bf16/f32   gamma-folded, pre-transposed (Wl_b @ Wb)^T
    bf_ref   : (1, D)  f32        folded fwd bias: beta@W_cf^T + bf@Wl_f^T + bl
    bb_ref   : (1, D)  f32        folded bwd bias: beta@W_cb^T + bb@Wl_b^T (masked)
    out_ref  : (TM, D) f32
    """
    x = x_ref[...]
    inv_d = 1.0 / x.shape[-1]

    # ---- LayerNorm statistics in one pass (sum and sum-of-squares) ----
    s1 = jnp.sum(x, axis=-1, keepdims=True)
    s2 = jnp.sum(x * x, axis=-1, keepdims=True)
    mu = s1 * inv_d
    var = jnp.maximum(s2 * inv_d - mu * mu, 0.0)
    # gamma / beta are folded into the weights / biases; only normalize here.
    y = ((x - mu) * lax.rsqrt(var + 1e-5)).astype(wf_ref.dtype)

    # ---- folded forward / backward projections (MXU, f32 accumulation) ----
    fwd = jnp.dot(y, wf_ref[...], preferred_element_type=jnp.float32)
    bwd = jnp.dot(y, wb_ref[...], preferred_element_type=jnp.float32)

    # The double padded-reverse cancels on valid rows and zeroes the padded
    # tail; the per-row mask reproduces that exactly.  Residual add (dropout is
    # identity in eval mode).
    out_ref[...] = fwd + bf_ref[...] + mask_ref[...] * (bwd + bb_ref[...]) + x


def bidirectional_basic_block(x_tbd, lengths, gamma, beta, Wf, bf, Wb, bb, Wl, bl,
                              *, use_bf16_matmul=True, row_tile=256):
    """x_tbd: [T, B, D] float32 (PyTorch layout). Returns (output [T,B,D], lengths, [])."""
    T, B, D = x_tbd.shape

    # ---------- fold the whole linear chain once in the wrapper ----------
    Wlf = Wl[:, :D]                       # (D, D)  forward half of output proj
    Wlb = Wl[:, D:]                       # (D, D)  backward half
    W_cf = Wlf @ Wf                       # y @ W_cf^T == (y @ Wf^T) @ Wlf^T
    W_cb = Wlb @ Wb
    # fold LayerNorm affine: (y_n*gamma + beta) @ W^T == y_n @ (gamma[:,None]*W^T) + beta @ W^T
    Wt_cf = gamma[:, None] * W_cf.T       # pre-transposed: kernel does y_n @ Wt_cf
    Wt_cb = gamma[:, None] * W_cb.T
    bias_f = beta @ W_cf.T + bf @ Wlf.T + bl      # applied to every row
    bias_b = beta @ W_cb.T + bb @ Wlb.T           # applied only to valid rows (masked)

    mm_dtype = jnp.bfloat16 if use_bf16_matmul else jnp.float32
    Wt_cf = Wt_cf.astype(mm_dtype)
    Wt_cb = Wt_cb.astype(mm_dtype)

    # ---------- flatten (B, T) rows, build per-row validity mask ----------
    x = jnp.transpose(x_tbd, (1, 0, 2)).reshape(B * T, D).astype(jnp.float32)
    mask = (jnp.arange(T, dtype=jnp.int32)[None, :]
            < lengths.astype(jnp.int32)[:, None]).astype(jnp.float32).reshape(B * T, 1)

    N = B * T
    tm = min(_round_up(N, 8), row_tile)   # row tile (multiple of 8 sublanes)
    n_pad = _round_up(N, tm)
    if n_pad != N:
        x = jnp.pad(x, ((0, n_pad - N), (0, 0)))
        mask = jnp.pad(mask, ((0, n_pad - N), (0, 0)))

    const2 = lambda i: (0, 0)
    grid_spec = pltpu.PrefetchScalarGridSpec(
        num_scalar_prefetch=0,
        grid=(n_pad // tm,),
        in_specs=[
            pl.BlockSpec((tm, D), lambda i: (i, 0)),   # x rows
            pl.BlockSpec((tm, 1), lambda i: (i, 0)),   # row mask
            pl.BlockSpec((D, D), const2),              # folded fwd weight (T)
            pl.BlockSpec((D, D), const2),              # folded bwd weight (T)
            pl.BlockSpec((1, D), const2),              # folded fwd bias
            pl.BlockSpec((1, D), const2),              # folded bwd bias
        ],
        out_specs=pl.BlockSpec((tm, D), lambda i: (i, 0)),
    )
    # Note: at production D (>=1k) consider pipeline_mode=pl.Buffered(1) on the
    # constant weight specs + vmem_limit_bytes to avoid double-buffering them.

    out = pl.pallas_call(
        _bidir_rows_kernel,
        out_shape=jax.ShapeDtypeStruct((n_pad, D), jnp.float32),
        grid_spec=grid_spec,
        compiler_params=pltpu.CompilerParams(
            dimension_semantics=("parallel",)),        # disjoint row tiles
    )(x, mask, Wt_cf, Wt_cb, bias_f.reshape(1, D), bias_b.reshape(1, D))

    out = out[:N].reshape(B, T, D).transpose(1, 0, 2)  # back to [T, B, D]
    return out, lengths, []


# ------------------------- reference (mirrors PyTorch exactly) -------------------------
def _reference_forward(x, lengths, gamma, beta, Wf, bf, Wb, bb, Wl, bl):
    x = np.asarray(x, np.float64)
    gamma, beta = np.asarray(gamma, np.float64), np.asarray(beta, np.float64)
    Wf, bf = np.asarray(Wf, np.float64), np.asarray(bf, np.float64)
    Wb, bb = np.asarray(Wb, np.float64), np.asarray(bb, np.float64)
    Wl, bl = np.asarray(Wl, np.float64), np.asarray(bl, np.float64)

    mu = x.mean(-1, keepdims=True)
    var = ((x - mu) ** 2).mean(-1, keepdims=True)
    y = (x - mu) / np.sqrt(var + 1e-5) * gamma + beta

    def rev(a):
        out = np.zeros_like(a)
        for i, L in enumerate(np.asarray(lengths)):
            out[:L, i] = a[:L, i][::-1]
        return out

    y_flip = rev(y)
    f = y @ Wf.T + bf
    b = y_flip @ Wb.T + bb
    b_flip = rev(b)
    cat = np.concatenate([f, b_flip], axis=-1)
    return cat @ Wl.T + bl + x


if __name__ == "__main__":
    T, B, D = 16, 2, 128
    key = jax.random.PRNGKey(0)
    keys = jax.random.split(key, 9)

    x = jax.random.normal(keys[0], (T, B, D), jnp.float32)
    lengths = jnp.array([16, 11], dtype=jnp.int32)

    # deterministic parameter init (shapes from the module's __init__)
    gamma = 1.0 + 0.1 * jax.random.normal(keys[1], (D,), jnp.float32)
    beta = 0.1 * jax.random.normal(keys[2], (D,), jnp.float32)
    lim = 1.0 / math.sqrt(D)
    Wf = jax.random.uniform(keys[3], (D, D), jnp.float32, -lim, lim)
    bf = jax.random.uniform(keys[4], (D,), jnp.float32, -lim, lim)
    Wb = jax.random.uniform(keys[5], (D, D), jnp.float32, -lim, lim)
    bb = jax.random.uniform(keys[6], (D,), jnp.float32, -lim, lim)
    lim2 = 1.0 / math.sqrt(2 * D)
    Wl = jax.random.uniform(keys[7], (D, 2 * D), jnp.float32, -lim2, lim2)
    bl = jax.random.uniform(keys[8], (D,), jnp.float32, -lim2, lim2)

    ref = _reference_forward(np.asarray(x), np.asarray(lengths),
                             gamma, beta, Wf, bf, Wb, bb, Wl, bl)

    # bf16-matmul fast path (v6e/v7x MXU-native)
    out, out_lengths, state = bidirectional_basic_block(
        x, lengths, gamma, beta, Wf, bf, Wb, bb, Wl, bl, use_bf16_matmul=True)
    out = jax.block_until_ready(out)
    np.testing.assert_allclose(np.asarray(out), ref, rtol=2.5e-2, atol=2.5e-2)

    # f32 path (tighter check of the algebraic fold / masking)
    out32, _, _ = bidirectional_basic_block(
        x, lengths, gamma, beta, Wf, bf, Wb, bb, Wl, bl, use_bf16_matmul=False)
    out32 = jax.block_until_ready(out32)
    np.testing.assert_allclose(np.asarray(out32), ref, rtol=1e-2, atol=1e-2)

    assert out.shape == (T, B, D) and state == []
    print("KERNEL_OK")
</pallas_src>

<mosaic_0001>
module attributes {stable_mosaic.version = 11 : i64} {
  func.func @_bidir_rows_kernel(%arg0: i32, %arg1: memref<32x128xf32, #tpu.memory_space<vmem>>, %arg2: memref<32x1xf32, #tpu.memory_space<vmem>>, %arg3: memref<128x128xbf16, #tpu.memory_space<vmem>>, %arg4: memref<128x128xbf16, #tpu.memory_space<vmem>>, %arg5: memref<1x128xf32, #tpu.memory_space<vmem>>, %arg6: memref<1x128xf32, #tpu.memory_space<vmem>>, %arg7: memref<32x128xf32, #tpu.memory_space<vmem>>) attributes {dimension_semantics = [#tpu.dimension_semantics<parallel>], iteration_bounds = array<i64: 1>, scalar_prefetch = 0 : i64, scratch_operands = 0 : i64, tpu.core_type = #tpu.core_type<tc>, window_params = [{transform_indices = @transform_0, window_bounds = array<i64: 32, 128>}, {transform_indices = @transform_1, window_bounds = array<i64: 32, 1>}, {pipeline_mode = #tpu.pipeline_mode<synchronous>, transform_indices = @transform_2, window_bounds = array<i64: 128, 128>}, {pipeline_mode = #tpu.pipeline_mode<synchronous>, transform_indices = @transform_3, window_bounds = array<i64: 128, 128>}, {pipeline_mode = #tpu.pipeline_mode<synchronous>, transform_indices = @transform_4, window_bounds = array<i64: 1, 128>}, {pipeline_mode = #tpu.pipeline_mode<synchronous>, transform_indices = @transform_5, window_bounds = array<i64: 1, 128>}, {transform_indices = @transform_6, window_bounds = array<i64: 32, 128>}]} {
    %c0 = arith.constant 0 : index
    %c0_0 = arith.constant 0 : index
    %0 = vector.load %arg1[%c0, %c0_0] : memref<32x128xf32, #tpu.memory_space<vmem>>, vector<32x128xf32>
    %cst = arith.constant dense<0.000000e+00> : vector<32xf32>
    %1 = vector.multi_reduction <add>, %0, %cst [1] : vector<32x128xf32> to vector<32xf32>
    %2 = vector.shape_cast %1 : vector<32xf32> to vector<32x1xf32>
    %3 = arith.mulf %0, %0 : vector<32x128xf32>
    %cst_1 = arith.constant dense<0.000000e+00> : vector<32xf32>
    %4 = vector.multi_reduction <add>, %3, %cst_1 [1] : vector<32x128xf32> to vector<32xf32>
    %5 = vector.shape_cast %4 : vector<32xf32> to vector<32x1xf32>
    %cst_2 = arith.constant 7.812500e-03 : f32
    %6 = vector.broadcast %cst_2 : f32 to vector<32x1xf32>
    %7 = arith.mulf %2, %6 : vector<32x1xf32>
    %cst_3 = arith.constant 7.812500e-03 : f32
    %8 = vector.broadcast %cst_3 : f32 to vector<32x1xf32>
    %9 = arith.mulf %5, %8 : vector<32x1xf32>
    %10 = arith.mulf %7, %7 : vector<32x1xf32>
    %11 = arith.subf %9, %10 : vector<32x1xf32>
    %cst_4 = arith.constant 0.000000e+00 : f32
    %12 = vector.broadcast %cst_4 : f32 to vector<32x1xf32>
    %13 = arith.maximumf %11, %12 : vector<32x1xf32>
    %14 = vector.broadcast %7 : vector<32x1xf32> to vector<32x128xf32>
    %15 = arith.subf %0, %14 : vector<32x128xf32>
    %cst_5 = arith.constant 9.99999974E-6 : f32
    %16 = vector.broadcast %cst_5 : f32 to vector<32x1xf32>
    %17 = arith.addf %13, %16 : vector<32x1xf32>
    %18 = math.rsqrt %17 : vector<32x1xf32>
    %19 = vector.broadcast %18 : vector<32x1xf32> to vector<32x128xf32>
    %20 = arith.mulf %15, %19 : vector<32x128xf32>
    %21 = arith.truncf %20 : vector<32x128xf32> to vector<32x128xbf16>
    %c0_6 = arith.constant 0 : index
    %c0_7 = arith.constant 0 : index
    %22 = vector.load %arg3[%c0_6, %c0_7] : memref<128x128xbf16, #tpu.memory_space<vmem>>, vector<128x128xbf16>
    %cst_8 = arith.constant dense<0.000000e+00> : vector<32x128xf32>
    %23 = tpu.matmul %21, %22, %cst_8 {dimension_numbers = #tpu.dot_dimension_numbers<[1], [0], [0], [1], [0, 0, 1, 1], [], []>} : vector<32x128xbf16>, vector<128x128xbf16>, vector<32x128xf32> -> vector<32x128xf32>
    %c0_9 = arith.constant 0 : index
    %c0_10 = arith.constant 0 : index
    %24 = vector.load %arg4[%c0_9, %c0_10] : memref<128x128xbf16, #tpu.memory_space<vmem>>, vector<128x128xbf16>
    %cst_11 = arith.constant dense<0.000000e+00> : vector<32x128xf32>
    %25 = tpu.matmul %21, %24, %cst_11 {dimension_numbers = #tpu.dot_dimension_numbers<[1], [0], [0], [1], [0, 0, 1, 1], [], []>} : vector<32x128xbf16>, vector<128x128xbf16>, vector<32x128xf32> -> vector<32x128xf32>
    %c0_12 = arith.constant 0 : index
    %c0_13 = arith.constant 0 : index
    %26 = vector.load %arg5[%c0_12, %c0_13] : memref<1x128xf32, #tpu.memory_space<vmem>>, vector<1x128xf32>
    %27 = vector.broadcast %26 : vector<1x128xf32> to vector<32x128xf32>
    %28 = arith.addf %23, %27 : vector<32x128xf32>
    %c0_14 = arith.constant 0 : index
    %c0_15 = arith.constant 0 : index
    %29 = vector.load %arg2[%c0_14, %c0_15] : memref<32x1xf32, #tpu.memory_space<vmem>>, vector<32x1xf32>
    %c0_16 = arith.constant 0 : index
    %c0_17 = arith.constant 0 : index
    %30 = vector.load %arg6[%c0_16, %c0_17] : memref<1x128xf32, #tpu.memory_space<vmem>>, vector<1x128xf32>
    %31 = vector.broadcast %30 : vector<1x128xf32> to vector<32x128xf32>
    %32 = arith.addf %25, %31 : vector<32x128xf32>
    %33 = vector.broadcast %29 : vector<32x1xf32> to vector<32x128xf32>
    %34 = arith.mulf %33, %32 : vector<32x128xf32>
    %35 = arith.addf %28, %34 : vector<32x128xf32>
    %36 = arith.addf %35, %0 : vector<32x128xf32>
    %c0_18 = arith.constant 0 : index
    %c0_19 = arith.constant 0 : index
    %37 = vector.load %arg7[%c0_18, %c0_19] : memref<32x128xf32, #tpu.memory_space<vmem>>, vector<32x128xf32>
    tpu.vector_store %arg7[%c0_18, %c0_19], %36 {strides = array<i32>} : memref<32x128xf32, #tpu.memory_space<vmem>>, vector<32x128xf32>,
    return
  }
  func.func @transform_0(%arg0: i32) -> (i32, i32) {
    %c0_i32 = arith.constant 0 : i32
    %c0_i32_0 = arith.constant 0 : i32
    return %arg0, %c0_i32 : i32, i32
  }
  func.func @transform_1(%arg0: i32) -> (i32, i32) {
    %c0_i32 = arith.constant 0 : i32
    %c0_i32_0 = arith.constant 0 : i32
    return %arg0, %c0_i32 : i32, i32
  }
  func.func @transform_2(%arg0: i32) -> (i32, i32) {
    %c0_i32 = arith.constant 0 : i32
    %c0_i32_0 = arith.constant 0 : i32
    %c0_i32_1 = arith.constant 0 : i32
    return %c0_i32, %c0_i32_0 : i32, i32
  }
  func.func @transform_3(%arg0: i32) -> (i32, i32) {
    %c0_i32 = arith.constant 0 : i32
    %c0_i32_0 = arith.constant 0 : i32
    %c0_i32_1 = arith.constant 0 : i32
    return %c0_i32, %c0_i32_0 : i32, i32
  }
  func.func @transform_4(%arg0: i32) -> (i32, i32) {
    %c0_i32 = arith.constant 0 : i32
    %c0_i32_0 = arith.constant 0 : i32
    %c0_i32_1 = arith.constant 0 : i32
    return %c0_i32, %c0_i32_0 : i32, i32
  }
  func.func @transform_5(%arg0: i32) -> (i32, i32) {
    %c0_i32 = arith.constant 0 : i32
    %c0_i32_0 = arith.constant 0 : i32
    %c0_i32_1 = arith.constant 0 : i32
    return %c0_i32, %c0_i32_0 : i32, i32
  }
  func.func @transform_6(%arg0: i32) -> (i32, i32) {
    %c0_i32 = arith.constant 0 : i32
    %c0_i32_0 = arith.constant 0 : i32
    return %arg0, %c0_i32 : i32, i32
  }
}

</mosaic_0001>

<bundles_post_ra>
// kernel: tpu_custom_call.1
= control target key start
LH: loop header
LB: loop body
LE: loop exit
PB: predicated region body
PF: predicated region fallthrough
CT: control target
= control target key end

     0   :  { %11 = vsyncpa [#allocation3], 0  ;;  %s701_s0 = inlined_call_operand.vmem [shape: f32[32,128], index: 0, kind: input, shape index: {}]   ;;  %s702_s1 = inlined_call_operand.vmem [shape: f32[32,1], index: 1, kind: input, shape index: {}]   ;;  %s703_s2 = inlined_call_operand.hbm [shape: bf16[128,128], index: 2, kind: input, shape index: {}]   ;;  %s704_s3 = inlined_call_operand.hbm [shape: bf16[128,128], index: 3, kind: input, shape index: {}]   ;;  %s705_s4 = inlined_call_operand.vmem [shape: f32[1,128], index: 4, kind: input, shape index: {}]   ;;  %s706_s5 = inlined_call_operand.vmem [shape: f32[1,128], index: 5, kind: input, shape index: {}]   ;;  %s707_s6 = inlined_call_operand.hbm [shape: f32[32,128], index: 6, kind: output, shape index: {}]  }
   0x1   :  { %12 = vsyncpa [#allocation6], 0 }
   0x2   :  { %13 = vsyncpa [#allocation4], 0  ;;  %s591_s21 = smov [#allocation2]  }
   0x3   :  { %s23_s22 = sshll.u32 %s591_s21, 4  ;;  %s24_s22 = int_to_ptr.vmem [resolvable:$true] %s23_s22 }
   0x4   :  { %s533_s23 = scalar_lea.vmem %s24_s22, 1024  ;;  %p538_p1 = scmp.lt.s32.totalorder %s24_s22, %s24_s22 }
   0x5   :  { %p534_p0 = scmp.ne.s32.totalorder %s24_s22, %s533_s23  ;;  %p539_p2 = scmp.lt.s32.totalorder %s533_s23, %s533_s23 }
   0x7   :  { %p540_p3 = por %p539_p2, %p538_p1 }
   0x9   :  { %p541_p4 = pnand %p540_p3, %p534_p0 }
   0xb   :  { %544 = shalt.err (!%p541_p4)
}
   0xc   :  { %s592_s24 = smov 64   ;;  %s593_s25 = smov 4  }
   0xd   :  { %29 = dma.hbm_to_vmem [thread:$0]  %s703_s2, 1024, %s24_s22, [#allocation3], %s592_s24, %s592_s24, %s593_s25  }
   0xe   :  { %s594_s28 = smov [#allocation5]  }
   0xf   :  { %s35_s29 = sshll.u32 %s594_s28, 4  ;;  %s36_s29 = int_to_ptr.vmem [resolvable:$true] %s35_s29 }
  0x10   :  { %s553_s30 = scalar_lea.vmem %s36_s29, 1024  ;;  %p558_p6 = scmp.lt.s32.totalorder %s36_s29, %s36_s29 }
  0x11   :  { %p554_p5 = scmp.ne.s32.totalorder %s36_s29, %s553_s30  ;;  %p559_p7 = scmp.lt.s32.totalorder %s553_s30, %s553_s30 }
  0x13   :  { %p560_p8 = por %p559_p7, %p558_p6 }
  0x15   :  { %p561_p9 = pnand %p560_p8, %p554_p5 }
  0x17   :  { %564 = shalt.err (!%p561_p9)
}
  0x18   :  { %41 = dma.hbm_to_vmem [thread:$0]  %s704_s3, 1024, %s36_s29, [#allocation6], %s592_s24, %s592_s24, %s593_s25  }
  0x19   :  { %585 = dma.done.wait [#allocation3], 1024  }
  0x1a   :  { %586 = vsyncadd [#allocation3], 4294966272 }
  0x1b   :  { %587 = dma.done.wait [#allocation6], 1024  }
  0x1c   :  { %588 = vsyncadd [#allocation6], 4294966272  ;;  %v643_v0 = vld [vmem:[%s701_s0 + $0x10] sm:$0xff]  ;;  %v648_v1 = vld [vmem:[%s701_s0] sm:$0xff]  ;;  %v595_v25 = vmov 0  }
  0x1d   :  { %v653_v2 = vld [vmem:[%s701_s0 + $0x18] sm:$0xff]  ;;  %61 = vadd.xlane.f32.xlu1 %v643_v0  ;;  %57 = vadd.xlane.f32.xlu0 %v648_v1  ;;  %v660_v3 = vld [vmem:[%s701_s0 + $0x8] sm:$0xff]  ;;  %v65_v5 = vmul.f32 %v648_v1, %v648_v1  ;;  %v67_v7 = vmul.f32 %v643_v0, %v643_v0  ;;  %v503_v10 = vld [vmem:[#allocation2 + $0x30] sm:$0xff]  }
  0x1e   :  { %v66_v4 = vmul.f32 %v660_v3, %v660_v3  ;;  %v68_v6 = vmul.f32 %v653_v2, %v653_v2  ;;  %v501_v8 = vld [vmem:[#allocation2 + $0x38] sm:$0xff]   ;;  %v504_v11 = vld [vmem:[#allocation5 + $0x30] sm:$0xff]   ;;  %v505_v12 = vld [vmem:[#allocation2 + $0x28] sm:$0xff]   ;;  %500 = vset.pattern.permute.xlu1 %v595_v25  ;;  %499 = vset.pattern.permute.xlu0 %v595_v25 }
  0x1f   :  { %v502_v9 = vld [vmem:[#allocation5 + $0x38] sm:$0xff]   ;;  %451 = vmatprep.subr.bf16.mxu0 %v501_v8  ;;  %v506_v13 = vld [vmem:[#allocation5 + $0x28] sm:$0xff]   ;;  %v507_v14 = vld [vmem:[#allocation2 + $0x20] sm:$0xff]  }
  0x20   :  { %471 = vmatprep.subr.bf16.mxu1 %v502_v9  ;;  %452 = vmatpush3.bf16.msra.mxu0 %v501_v8  ;;  %v508_v15 = vld [vmem:[#allocation5 + $0x20] sm:$0xff]   ;;  %v509_v16 = vld [vmem:[#allocation2 + $0x18] sm:$0xff]   ;;  %v511_v18 = vld [vmem:[#allocation2 + $0x10] sm:$0xff]  }
  0x21   :  { %63 = vadd.xlane.f32.xlu1 %v653_v2  ;;  %59 = vadd.xlane.f32.xlu0 %v660_v3  ;;  %v510_v17 = vld [vmem:[#allocation5 + $0x18] sm:$0xff]   ;;  %v512_v19 = vld [vmem:[#allocation5 + $0x10] sm:$0xff]   ;;  %v513_v20 = vld [vmem:[#allocation2 + $0x8] sm:$0xff]  }
  0x22   :  { %472 = vmatpush3.bf16.msra.mxu1 %v502_v9  ;;  %453 = vmatprep.subr.bf16.mxu0 %v503_v10  ;;  %v514_v21 = vld [vmem:[#allocation5 + $0x8] sm:$0xff]   ;;  %v515_v22 = vld [vmem:[#allocation2] sm:$0xff]   ;;  %v253_v27 = vld [vmem:[%s702_s1 + $0x10] sm:$0xff] }
  0x23   :  { %473 = vmatprep.subr.bf16.mxu1 %v504_v11  ;;  %v516_v23 = vld [vmem:[#allocation5] sm:$0xff]   ;;  %v252_v24 = vld [vmem:[%s702_s1 + $0x8] sm:$0xff]  ;;  %v254_v28 = vld [vmem:[%s702_s1 + $0x18] sm:$0xff] }
  0x24   :  { %454 = vmatpush3.bf16.msra.mxu0 %v503_v10  ;;  %v251_v26 = vld [vmem:[%s702_s1] sm:$0xff] }
  0x25   :  { %71 = vadd.xlane.f32.xlu1 %v66_v4  ;;  %69 = vadd.xlane.f32.xlu0 %v65_v5 }
  0x26   :  { %474 = vmatpush3.bf16.msra.mxu1 %v504_v11  ;;  %455 = vmatprep.subr.bf16.mxu0 %v505_v12 }
  0x27   :  { %475 = vmatprep.subr.bf16.mxu1 %v506_v13 }
  0x28   :  { %456 = vmatpush3.bf16.msra.mxu0 %v505_v12 }
  0x29   :  { %75 = vadd.xlane.f32.xlu1 %v68_v6  ;;  %73 = vadd.xlane.f32.xlu0 %v67_v7 }
  0x2a   :  { %476 = vmatpush3.bf16.msra.mxu1 %v506_v13  ;;  %457 = vmatprep.subr.bf16.mxu0 %v507_v14 }
  0x2b   :  { %477 = vmatprep.subr.bf16.mxu1 %v508_v15 }
  0x2c   :  { %458 = vmatpush3.bf16.msra.mxu0 %v507_v14 }
  0x2d   :  { %459 = vmatprep.subr.bf16.mxu0 %v509_v16 }
  0x2e   :  { %478 = vmatpush3.bf16.msra.mxu1 %v508_v15 }
  0x2f   :  { %479 = vmatprep.subr.bf16.mxu1 %v510_v17 }
  0x30   :  { %460 = vmatpush3.bf16.msra.mxu0 %v509_v16  ;;  %v422_v16 = vld [vmem:[%s706_s5] ss:$0 sm:$0xff] }
  0x31   :  { %461 = vmatprep.subr.bf16.mxu0 %v511_v18 }
  0x32   :  { %480 = vmatpush3.bf16.msra.mxu1 %v510_v17 }
  0x33   :  { %481 = vmatprep.subr.bf16.mxu1 %v512_v19 }
  0x34   :  { %462 = vmatpush3.bf16.msra.mxu0 %v511_v18 }
  0x35   :  { %463 = vmatprep.subr.bf16.mxu0 %v513_v20 }
  0x36   :  { %482 = vmatpush3.bf16.msra.mxu1 %v512_v19  ;;  %v413_v19 = vld [vmem:[%s705_s4] ss:$0 sm:$0xff]  ;;  %s596_s4 = smov [#allocation7]  }
  0x37   :  { %483 = vmatprep.subr.bf16.mxu1 %v514_v21  ;;  %s400_s5 = sshll.u32 %s596_s4, 4  ;;  %s401_s5 = int_to_ptr.vmem [resolvable:$true] %s400_s5 }
  0x38   :  { %464 = vmatpush3.bf16.msra.mxu0 %v513_v20  ;;  %s565_s25 = scalar_lea.vmem %s401_s5, 512  ;;  %p570_p11 = scmp.lt.s32.totalorder %s401_s5, %s401_s5 }
  0x39   :  { %465 = vmatprep.subr.bf16.mxu0 %v515_v22  ;;  %p566_p10 = scmp.ne.s32.totalorder %s401_s5, %s565_s25  ;;  %p571_p12 = scmp.lt.s32.totalorder %s565_s25, %s565_s25 }
  0x3a   :  { %484 = vmatpush3.bf16.msra.mxu1 %v514_v21  ;;  %366 = vperm.xlu1 %500, %v252_v24  }
  0x3b   :  { %485 = vmatprep.subr.bf16.mxu1 %v516_v23  ;;  %p572_p13 = por %p571_p12, %p570_p11 }
  0x3c   :  { %466 = vmatpush3.bf16.msra.mxu0 %v515_v22 }
  0x3d   :  { %p573_p0 = pnand %p572_p13, %p566_p10 }
  0x3e   :  { %486 = vmatpush3.bf16.msra.mxu1 %v516_v23  ;;  %371 = vperm.xlu1 %500, %v253_v27  }
  0x3f   :  { %361 = vperm.xlu0 %499, %v251_v26  }
  0x42   :  { %376 = vperm.xlu1 %500, %v254_v28  }
  0xa6   :  { %v62_v29 = vpop.xlane.xlu1 %61  ;;  %v58_v30 = vpop.xlane.xlu0 %57 }
  0xa7   :  { %v77_v33 = vmul.f32 0.0078125, %v58_v30  ;;  %v79_v35 = vmul.f32 0.0078125, %v62_v29 }
  0xa9   :  { %v85_v39 = vmul.f32 %v77_v33, %v77_v33  ;;  %v87_v45 = vmul.f32 %v79_v35, %v79_v35  ;;  %v97_v63 = vsub.f32 %v648_v1, %v77_v33  ;;  %v99_v9 = vsub.f32 %v643_v0, %v79_v35 }
  0xaa   :  { %v64_v31 = vpop.xlane.xlu1 %63  ;;  %v60_v32 = vpop.xlane.xlu0 %59 }
  0xab   :  { %v78_v34 = vmul.f32 0.0078125, %v60_v32  ;;  %v80_v36 = vmul.f32 0.0078125, %v64_v31 }
  0xad   :  { %v86_v40 = vmul.f32 %v78_v34, %v78_v34  ;;  %v88_v46 = vmul.f32 %v80_v36, %v80_v36  ;;  %v98_v61 = vsub.f32 %v660_v3, %v78_v34  ;;  %v100_v7 = vsub.f32 %v653_v2, %v80_v36 }
  0xae   :  { %v72_v37 = vpop.xlane.xlu1 %71  ;;  %v70_v38 = vpop.xlane.xlu0 %69 }
  0xaf   :  { %v82_v41 = vmul.f32 0.0078125, %v72_v37  ;;  %v81_v42 = vmul.f32 0.0078125, %v70_v38 }
  0xb1   :  { %v90_v43 = vsub.f32 %v82_v41, %v86_v40  ;;  %v89_v44 = vsub.f32 %v81_v42, %v85_v39 }
  0xb2   :  { %v76_v47 = vpop.xlane.xlu1 %75  ;;  %v74_v48 = vpop.xlane.xlu0 %73 }
  0xb3   :  { %v94_v49 = vmax.f32 %v90_v43, 0.0  ;;  %v93_v50 = vmax.f32 %v89_v44, 0.0  ;;  %v84_v51 = vmul.f32 0.0078125, %v76_v47  ;;  %v83_v52 = vmul.f32 0.0078125, %v74_v48 }
  0xb5   :  { %v102_v53 = vadd.f32 1e-05, %v94_v49  ;;  %v101_v54 = vadd.f32 1e-05, %v93_v50  ;;  %v92_v55 = vsub.f32 %v84_v51, %v88_v46  ;;  %v91_v56 = vsub.f32 %v83_v52, %v87_v45 }
  0xb6   :  { %v367_v15 = vpop.permute.xlu1 %366 }
  0xb7   :  { %517 = vrsqrt.f32 %v102_v53  ;;  %v96_v57 = vmax.f32 %v92_v55, 0.0  ;;  %v95_v58 = vmax.f32 %v91_v56, 0.0 }
  0xb8   :  { %519 = vrsqrt.f32 %v101_v54 }
  0xb9   :  { %v104_v59 = vadd.f32 1e-05, %v96_v57  ;;  %v103_v60 = vadd.f32 1e-05, %v95_v58 }
  0xba   :  { %v372_v17 = vpop.permute.xlu1 %371  ;;  %v362_v22 = vpop.permute.xlu0 %361 }
  0xbb   :  { %521 = vrsqrt.f32 %v104_v59 }
  0xbc   :  { %523 = vrsqrt.f32 %v103_v60 }
  0xbe   :  { %v377_v34 = vpop.permute.xlu1 %376 }
  0xc4   :  { %v518_v62 = vpop.eup %517 }
  0xc5   :  { %v520_v4 = vpop.eup %519  ;;  %v110_v5 = vmul.f32 %v518_v62, %v98_v61 }
  0xc6   :  { %v109_v6 = vmul.f32 %v520_v4, %v97_v63 }
  0xc8   :  { %v522_v8 = vpop.eup %521  ;;  %v113_v10 = vpack.c.bf16 %v110_v5, %v109_v6 }
  0xc9   :  { %v524_v11 = vpop.eup %523  ;;  %v112_v12 = vmul.f32 %v522_v8, %v100_v7 }
  0xca   :  { %467 = vmatprep.mubr.bf16.mxu0 %v113_v10  ;;  %487 = vmatprep.mubr.bf16.mxu1 %v113_v10  ;;  %v111_v13 = vmul.f32 %v524_v11, %v99_v9 }
  0xcc   :  { %v114_v14 = vpack.c.bf16 %v112_v12, %v111_v13 }
  0xce   :  { %468 = vmatmul.mubr.bf16.vlgmr.msra.gmra.mxu0 %v114_v14  ;;  %488 = vmatmul.mubr.bf16.vlgmr.msra.gmra.mxu1 %v114_v14 }
 0x18e   :  { %v469_v18 = vpop.f32.mrf.mxu0  ;;  %v489_v20 = vpop.f32.mrf.mxu1 }
 0x18f   :  { %v353_v21 = vadd.f32 %v489_v20, %v422_v16  ;;  %v245_v25 = vadd.f32 %v469_v18, %v413_v19 }
 0x190   :  { %v236_v23 = vpop.f32.mrf.mxu0  ;;  %v344_v24 = vpop.f32.mrf.mxu1 }
 0x191   :  { %v381_v26 = vmul.f32 %v372_v17, %v353_v21  ;;  %v345_v27 = vadd.f32 %v422_v16, %v344_v24  ;;  %v237_v31 = vadd.f32 %v413_v19, %v236_v23 }
 0x192   :  { %v470_v28 = vpop.f32.mrf.mxu0  ;;  %v490_v29 = vpop.f32.mrf.mxu1 }
 0x193   :  { %v385_v30 = vadd.f32 %v381_v26, %v245_v25  ;;  %v356_v32 = vadd.f32 %v490_v29, %v422_v16  ;;  %v379_v33 = vmul.f32 %v362_v22, %v345_v27  ;;  %v248_v37 = vadd.f32 %v470_v28, %v413_v19 }
 0x194   :  { %v347_v35 = vpop.f32.mrf.mxu1  ;;  %v239_v40 = vpop.f32.mrf.mxu0 }
 0x195   :  { %v389_v36 = vadd.f32 %v385_v30, %v643_v0  ;;  %v382_v38 = vmul.f32 %v377_v34, %v356_v32  ;;  %v383_v39 = vadd.f32 %v379_v33, %v237_v31  ;;  %v348_v41 = vadd.f32 %v422_v16, %v347_v35 }
 0x196   :  { %v240_v44 = vadd.f32 %v413_v19, %v239_v40 }
 0x197   :  { %393 = vst [vmem:[#allocation7 + $0x10] sm:$0xff] %v389_v36  ;;  %v386_v42 = vadd.f32 %v382_v38, %v248_v37  ;;  %v387_v43 = vadd.f32 %v383_v39, %v648_v1  ;;  %v380_v45 = vmul.f32 %v367_v15, %v348_v41 }
 0x199   :  { %v390_v46 = vadd.f32 %v386_v42, %v653_v2  ;;  %391 = vst [vmem:[#allocation7] sm:$0xff] %v387_v43  ;;  %v384_v47 = vadd.f32 %v380_v45, %v240_v44 }
 0x19b   :  { %394 = vst [vmem:[#allocation7 + $0x18] sm:$0xff] %v390_v46  ;;  %v388_v0 = vadd.f32 %v384_v47, %v660_v3 }
 0x19d   :  { %392 = vst [vmem:[#allocation7 + $0x8] sm:$0xff] %v388_v0 }
 0x19e   :  { %576 = shalt.err (!%p573_p0)
}
 0x19f   :  { %s597_s26 = smov 128   ;;  %s598_s27 = smov 8  }
 0x1a0   :  { %406 = dma.vmem_to_hbm [thread:$0]  %s401_s5, 512, %s707_s6, [#allocation4], %s597_s26, %s597_s26, %s598_s27  }
 0x1a1   :  { %589 = dma.done.wait [#allocation4], 512  }
 0x1a2   :  { %590 = vsyncadd [#allocation4], 4294966784 }
 0x1a3   :  { %410 = vsyncpa [#allocation3], 1 }
 0x1a4   :  { %411 = vsyncpa [#allocation6], 1 }
 0x1a5   :  { %412 = vsyncpa [#allocation4], 1 }

</bundles_post_ra>
